<compile_context>
chip_gen: v7x
topology: tpu7x:2x2x1
jax: 0.10.0
libtpu: 0.0.40
codegen_flags: <defaults>
</compile_context>

<pallas_src>
import math
from functools import partial

import numpy as np
import jax
import jax.numpy as jnp
from jax.experimental import pallas as pl
from jax.experimental.pallas import tpu as pltpu


# ----------------------------------------------------------------------------
# tiling helpers
# ----------------------------------------------------------------------------

def _row_tile(n):
    for t in (256, 128, 64, 32, 16, 8):
        if n % t == 0:
            return t
    return n                      # fall back to whole axis (== full dim, legal)


def _col_tile(n):
    for t in (512, 256, 128):     # keep output tiles lane-dense (>=128)
        if n % t == 0:
            return t
    return n


_PARALLEL2 = pltpu.CompilerParams(dimension_semantics=("parallel", "parallel"))


# ----------------------------------------------------------------------------
# fused LayerNorm + matmul
# ----------------------------------------------------------------------------

def _ln_matmul_kernel(x_ref, g_ref, b_ref, w_ref, o_ref):
    x = x_ref[...].astype(jnp.float32)
    mu = jnp.mean(x, axis=-1, keepdims=True)
    xc = x - mu
    var = jnp.mean(xc * xc, axis=-1, keepdims=True)
    xn = xc * jax.lax.rsqrt(var + 1e-5)
    xn = xn * g_ref[...].astype(jnp.float32) + b_ref[...].astype(jnp.float32)
    o_ref[...] = jnp.dot(xn.astype(w_ref.dtype), w_ref[...],
                         preferred_element_type=jnp.float32).astype(o_ref.dtype)


def pallas_ln_matmul(x, gamma, beta, w, out_dtype=jnp.bfloat16):
    lead, k = x.shape[:-1], x.shape[-1]
    x2 = x.reshape(-1, k)
    r, nout = x2.shape[0], w.shape[-1]
    tm, tn = _row_tile(r), _col_tile(nout)
    out = pl.pallas_call(
        _ln_matmul_kernel,
        out_shape=jax.ShapeDtypeStruct((r, nout), out_dtype),
        grid=(r // tm, nout // tn),
        in_specs=[pl.BlockSpec((tm, k), lambda i, j: (i, 0)),
                  pl.BlockSpec((1, k), lambda i, j: (0, 0)),
                  pl.BlockSpec((1, k), lambda i, j: (0, 0)),
                  pl.BlockSpec((k, tn), lambda i, j: (0, j))],
        out_specs=pl.BlockSpec((tm, tn), lambda i, j: (i, j)),
        compiler_params=_PARALLEL2,
    )(x2, gamma, beta, w)
    return out.reshape(*lead, nout)


# ----------------------------------------------------------------------------
# plain matmul (context projections) and matmul + fused residual add
# ----------------------------------------------------------------------------

def _matmul_kernel(x_ref, w_ref, o_ref):
    o_ref[...] = jnp.dot(x_ref[...], w_ref[...],
                         preferred_element_type=jnp.float32).astype(o_ref.dtype)


def pallas_matmul(x, w, out_dtype=jnp.bfloat16):
    lead, k = x.shape[:-1], x.shape[-1]
    x2 = x.reshape(-1, k)
    r, nout = x2.shape[0], w.shape[-1]
    tm, tn = _row_tile(r), _col_tile(nout)
    out = pl.pallas_call(
        _matmul_kernel,
        out_shape=jax.ShapeDtypeStruct((r, nout), out_dtype),
        grid=(r // tm, nout // tn),
        in_specs=[pl.BlockSpec((tm, k), lambda i, j: (i, 0)),
                  pl.BlockSpec((k, tn), lambda i, j: (0, j))],
        out_specs=pl.BlockSpec((tm, tn), lambda i, j: (i, j)),
        compiler_params=_PARALLEL2,
    )(x2, w)
    return out.reshape(*lead, nout)


def _matmul_res_kernel(a_ref, w_ref, r_ref, o_ref):
    acc = jnp.dot(a_ref[...], w_ref[...], preferred_element_type=jnp.float32)
    o_ref[...] = (acc + r_ref[...].astype(jnp.float32)).astype(o_ref.dtype)


def pallas_matmul_res(a, w, res, out_dtype=jnp.bfloat16):
    lead, k = a.shape[:-1], a.shape[-1]
    a2 = a.reshape(-1, k)
    r, nout = a2.shape[0], w.shape[-1]
    res2 = res.reshape(r, nout)
    tm, tn = _row_tile(r), _col_tile(nout)
    out = pl.pallas_call(
        _matmul_res_kernel,
        out_shape=jax.ShapeDtypeStruct((r, nout), out_dtype),
        grid=(r // tm, nout // tn),
        in_specs=[pl.BlockSpec((tm, k), lambda i, j: (i, 0)),
                  pl.BlockSpec((k, tn), lambda i, j: (0, j)),
                  pl.BlockSpec((tm, tn), lambda i, j: (i, j))],
        out_specs=pl.BlockSpec((tm, tn), lambda i, j: (i, j)),
        compiler_params=_PARALLEL2,
    )(a2, w, res2)
    return out.reshape(*lead, nout)


# ----------------------------------------------------------------------------
# fused GEGLU + LayerNorm + W2 + residual (second half of FeedForward)
# ----------------------------------------------------------------------------

_SQRT1_2 = 0.7071067811865476


def _geglu_ln_matmul_res_kernel(h_ref, g_ref, b_ref, w_ref, r_ref, o_ref):
    f = h_ref.shape[-1] // 2
    val = h_ref[:, :f].astype(jnp.float32)        # gelu branch  (reference: x)
    gate = h_ref[:, f:].astype(jnp.float32)       # gate branch
    act = gate * (0.5 * val * (1.0 + jax.lax.erf(val * _SQRT1_2)))   # gate*gelu(x)
    mu = jnp.mean(act, axis=-1, keepdims=True)
    ac = act - mu
    var = jnp.mean(ac * ac, axis=-1, keepdims=True)
    an = ac * jax.lax.rsqrt(var + 1e-5)
    an = an * g_ref[...].astype(jnp.float32) + b_ref[...].astype(jnp.float32)
    acc = jnp.dot(an.astype(w_ref.dtype), w_ref[...],
                  preferred_element_type=jnp.float32)
    o_ref[...] = (acc + r_ref[...].astype(jnp.float32)).astype(o_ref.dtype)


def pallas_geglu_ln_matmul_res(h, gamma, beta, w, res, out_dtype=jnp.bfloat16):
    lead, k2 = h.shape[:-1], h.shape[-1]
    f = k2 // 2
    h2 = h.reshape(-1, k2)
    r, nout = h2.shape[0], w.shape[-1]
    res2 = res.reshape(r, nout)
    tm, tn = _row_tile(r), _col_tile(nout)
    out = pl.pallas_call(
        _geglu_ln_matmul_res_kernel,
        out_shape=jax.ShapeDtypeStruct((r, nout), out_dtype),
        grid=(r // tm, nout // tn),
        in_specs=[pl.BlockSpec((tm, k2), lambda i, j: (i, 0)),
                  pl.BlockSpec((1, f), lambda i, j: (0, 0)),
                  pl.BlockSpec((1, f), lambda i, j: (0, 0)),
                  pl.BlockSpec((f, tn), lambda i, j: (0, j)),
                  pl.BlockSpec((tm, tn), lambda i, j: (i, j))],
        out_specs=pl.BlockSpec((tm, tn), lambda i, j: (i, j)),
        compiler_params=_PARALLEL2,
    )(h2, gamma, beta, w, res2)
    return out.reshape(*lead, nout)


# ----------------------------------------------------------------------------
# flash-style attention core: grid = (batch*heads, kv-tiles), online softmax.
# Heads are selected directly from the fused projection outputs via the
# BlockSpec index_map (per-head lane blocks of width dim_head); the learned
# null key/value is folded in at the first kv step (always unmasked).
# ----------------------------------------------------------------------------

def _attn_kernel(q_ref, k_ref, v_ref, nk_ref, nv_ref, msk_ref, o_ref,
                 m_sc, l_sc, acc_sc):
    kv = pl.program_id(1)
    q = q_ref[0]                                      # (N, Dh) bf16 (pre-scaled)

    @pl.when(kv == 0)
    def _():
        nk = nk_ref[0]                                # (1, Dh)
        nv = nv_ref[0].astype(jnp.float32)            # (1, Dh)
        s_null = jax.lax.dot_general(q, nk, (((1,), (1,)), ((), ())),
                                     preferred_element_type=jnp.float32)  # (N,1)
        m_sc[...] = s_null
        l_sc[...] = jnp.ones(l_sc.shape, jnp.float32)
        acc_sc[...] = jnp.broadcast_to(nv, acc_sc.shape)

    k = k_ref[0]                                      # (tkv, Dh) bf16
    v = v_ref[0]                                      # (tkv, Dh) bf16
    msk = msk_ref[0]                                  # (1, tkv)  f32
    s = jax.lax.dot_general(q, k, (((1,), (1,)), ((), ())),
                            preferred_element_type=jnp.float32)           # (N,tkv)
    s = jnp.where(msk > 0.5, s, jnp.float32(-1e30))
    m_prev = m_sc[...]
    m_new = jnp.maximum(m_prev, jnp.max(s, axis=-1, keepdims=True))
    alpha = jnp.exp(m_prev - m_new)
    p = jnp.exp(s - m_new)
    l_sc[...] = alpha * l_sc[...] + jnp.sum(p, axis=-1, keepdims=True)
    acc_sc[...] = alpha * acc_sc[...] + jnp.dot(p.astype(v.dtype), v,
                                                preferred_element_type=jnp.float32)
    m_sc[...] = m_new

    @pl.when(kv == pl.num_programs(1) - 1)
    def _():
        o_ref[0] = (acc_sc[...] *
                    pl.reciprocal(l_sc[...], approx=True)).astype(o_ref.dtype)


def pallas_attention(q_src, k_src, v_src, q_off, k_off, v_off,
                     null_k, null_v, mask, *, heads, dim_head):
    """q_src: (B, N, *) with head h of Q at lane block q_off + h (block = dim_head).
       k_src/v_src: (B, M, *) likewise. mask: (B, 1, M) float (1 keep / 0 drop);
       the null key/value is always visible. Returns (B, N, heads*dim_head)."""
    B, N, _ = q_src.shape
    M = k_src.shape[1]
    H, Dh = heads, dim_head
    assert Dh % 128 == 0, "per-head lane slicing requires dim_head % 128 == 0"

    # kv tiling: single tile for small M, otherwise 512-wide tiles with padding.
    if M <= 512:
        tkv, Mp = M, M
    else:
        tkv = 512
        Mp = ((M + tkv - 1) // tkv) * tkv
    if Mp != M:
        k_src = jnp.pad(k_src, ((0, 0), (0, Mp - M), (0, 0)))
        v_src = jnp.pad(v_src, ((0, 0), (0, Mp - M), (0, 0)))
        mask = jnp.pad(mask, ((0, 0), (0, 0), (0, Mp - M)))
    n_kv = Mp // tkv

    out = pl.pallas_call(
        _attn_kernel,
        out_shape=jax.ShapeDtypeStruct((B, N, H * Dh), jnp.bfloat16),
        grid=(B * H, n_kv),
        in_specs=[
            pl.BlockSpec((1, N, Dh), lambda g, kv: (g // H, 0, q_off + g % H)),
            pl.BlockSpec((1, tkv, Dh), lambda g, kv: (g // H, kv, k_off + g % H)),
            pl.BlockSpec((1, tkv, Dh), lambda g, kv: (g // H, kv, v_off + g % H)),
            pl.BlockSpec((1, 1, Dh), lambda g, kv: (g % H, 0, 0)),
            pl.BlockSpec((1, 1, Dh), lambda g, kv: (g % H, 0, 0)),
            pl.BlockSpec((1, 1, tkv), lambda g, kv: (g // H, 0, kv)),
        ],
        out_specs=pl.BlockSpec((1, N, Dh), lambda g, kv: (g // H, 0, g % H)),
        scratch_shapes=[pltpu.VMEM((N, 1), jnp.float32),
                        pltpu.VMEM((N, 1), jnp.float32),
                        pltpu.VMEM((N, Dh), jnp.float32)],
        compiler_params=pltpu.CompilerParams(
            dimension_semantics=("parallel", "arbitrary")),
    )(q_src, k_src, v_src, null_k, null_v, mask)
    return out


# ----------------------------------------------------------------------------
# Transformer (token_emb + pos_emb + [self-attn, cross-attn, GEGLU FF] x depth
#              + LayerNorm + to_logits), matching muse_maskgit_pytorch.
# ----------------------------------------------------------------------------

@partial(jax.jit, static_argnames=('heads', 'dim_head'))
def transformer_logits(tp, ids, ctx_kvs, ctx_mask, *, heads, dim_head):
    b, n = ids.shape
    H = heads
    x = (jnp.take(tp['token_emb'], ids, axis=0) + tp['pos_emb'][:n][None])
    x = x.astype(jnp.bfloat16)
    self_mask = jnp.ones((b, 1, n), jnp.float32)

    for (ap, cp, fp), ckv in zip(tp['layers'], ctx_kvs):
        # --- self attention (LN+QKV fused; scale folded into Wq) ---
        qkv = pallas_ln_matmul(x, ap['norm_g'], ap['norm_b'], ap['wqkv'])
        attn = pallas_attention(qkv, qkv, qkv, 0, H, 2 * H,
                                ap['null_k'], ap['null_v'], self_mask,
                                heads=heads, dim_head=dim_head)
        x = pallas_matmul_res(attn, ap['wout'], x)

        # --- cross attention (context K/V precomputed once per generate) ---
        q = pallas_ln_matmul(x, cp['norm_g'], cp['norm_b'], cp['wq'])
        attn = pallas_attention(q, ckv, ckv, 0, 0, H,
                                cp['null_k'], cp['null_v'], ctx_mask,
                                heads=heads, dim_head=dim_head)
        x = pallas_matmul_res(attn, cp['wout'], x)

        # --- feed forward: LN+W1, then GEGLU+LN+W2+residual ---
        h12 = pallas_ln_matmul(x, fp['norm1_g'], fp['norm1_b'], fp['w1'])
        x = pallas_geglu_ln_matmul_res(h12, fp['norm2_g'], fp['norm2_b'],
                                       fp['w2'], x)

    return pallas_ln_matmul(x, tp['final_norm_g'], tp['final_norm_b'],
                            tp['to_logits'], out_dtype=jnp.float32)


@jax.jit
def prepare_context(tp, text_embeds, cond_token_ids):
    """Per-generate constants: cross-attn K/V per layer, cond & null masks."""
    b = text_embeds.shape[0]
    context = text_embeds.astype(jnp.bfloat16)
    if tp['text_proj'] is not None:
        context = pallas_matmul(context, tp['text_proj'])
    text_mask = jnp.any(text_embeds != 0, axis=-1).astype(jnp.float32)   # (b, T)

    if cond_token_ids is not None:
        cond_flat = cond_token_ids.reshape(b, -1)
        cond_emb = jnp.take(tp['token_emb'], cond_flat, axis=0).astype(jnp.bfloat16)
        context = jnp.concatenate([context, cond_emb], axis=1)
        cond_mask = jnp.ones((b, cond_flat.shape[1]), jnp.float32)
        mask_cond = jnp.concatenate([text_mask, cond_mask], axis=-1)
        # CFG null pass drops the text context; conditioning tokens stay visible
        mask_null = jnp.concatenate([jnp.zeros_like(text_mask), cond_mask], axis=-1)
    else:
        mask_cond = text_mask
        mask_null = jnp.zeros_like(text_mask)

    ctx_kvs = tuple(pallas_matmul(context, cp['wkv'])
                    for (_, cp, _) in tp['layers'])
    return ctx_kvs, mask_cond[:, None, :], mask_null[:, None, :]


# ----------------------------------------------------------------------------
# Deterministic parameter initialization (shapes follow Transformer.__init__)
# ----------------------------------------------------------------------------

def init_transformer_params(key, *, num_tokens, dim, seq_len, depth,
                            dim_head, heads, ff_mult, text_embed_dim):
    inner = dim_head * heads
    ff_inner = int(dim * ff_mult * 2 / 3)
    ff_inner = ((ff_inner + 127) // 128) * 128      # lane-dense FF width (perf)
    q_scale = dim_head ** -0.5
    keys = list(jax.random.split(key, 8 + depth * 16))
    it = iter(keys)

    def nrm(shape, s=0.02):
        return (jax.random.normal(next(it), shape, jnp.float32) * s).astype(jnp.bfloat16)

    tp = {
        'token_emb': nrm((num_tokens + 1, dim)),
        'pos_emb': nrm((seq_len, dim)),
        'text_proj': None if text_embed_dim == dim else nrm((text_embed_dim, dim)),
        'final_norm_g': jnp.ones((1, dim), jnp.float32),
        'final_norm_b': jnp.zeros((1, dim), jnp.float32),
        'to_logits': nrm((dim, num_tokens)),
        'layers': [],
    }

    def attn_params(fuse_qkv):
        wq = jax.random.normal(next(it), (dim, inner), jnp.float32) * 0.02
        wq = (wq * q_scale).astype(jnp.bfloat16)     # fold softmax scale into Wq
        wkv = nrm((dim, 2 * inner))
        p = dict(
            norm_g=jnp.ones((1, dim), jnp.float32),
            norm_b=jnp.zeros((1, dim), jnp.float32),
            null_k=nrm((heads, 1, dim_head), s=1.0),
            null_v=nrm((heads, 1, dim_head), s=1.0),
            wout=nrm((inner, dim)),
        )
        if fuse_qkv:
            p['wqkv'] = jnp.concatenate([wq, wkv], axis=1)   # [ Q | K | V ]
        else:
            p['wq'] = wq
            p['wkv'] = wkv
        return p

    for _ in range(depth):
        ff = dict(
            norm1_g=jnp.ones((1, dim), jnp.float32),
            norm1_b=jnp.zeros((1, dim), jnp.float32),
            w1=nrm((dim, 2 * ff_inner)),                     # [ value | gate ]
            norm2_g=jnp.ones((1, ff_inner), jnp.float32),
            norm2_b=jnp.zeros((1, ff_inner), jnp.float32),
            w2=nrm((ff_inner, dim)),
        )
        tp['layers'].append((attn_params(True), attn_params(False), ff))
    return tp


# ----------------------------------------------------------------------------
# MaskGit.generate (iterative masked sampling) and Muse.forward composition
# ----------------------------------------------------------------------------

def maskgit_generate(tp, text_embeds, *, fmap_size, mask_id, heads, dim_head,
                     key, temperature=1.0, topk_filter_thres=0.9, timesteps=18,
                     cond_scale=3.0, cond_token_ids=None):
    b = text_embeds.shape[0]
    seq_len = fmap_size ** 2
    ids = jnp.full((b, seq_len), mask_id, jnp.int32)
    scores = jnp.zeros((b, seq_len), jnp.float32)
    starting_temperature = temperature

    # constants across timesteps: cross-attn K/V per layer, cond & null masks
    ctx_kvs, mask_cond, mask_null = prepare_context(tp, text_embeds, cond_token_ids)

    times = np.linspace(0.0, 1.0, timesteps)
    for timestep, steps_until_x0 in zip(times, reversed(range(timesteps))):
        rand_mask_prob = math.cos(float(timestep) * math.pi * 0.5)
        num_token_masked = max(int(rand_mask_prob * seq_len), 1)

        _, masked_indices = jax.lax.top_k(scores, num_token_masked)
        ids = ids.at[jnp.arange(b)[:, None], masked_indices].set(mask_id)

        # forward_with_cond_scale: real classifier-free guidance (null pass drops
        # the text context; upstream muse_maskgit_pytorch behaviour).
        logits = transformer_logits(tp, ids, ctx_kvs, mask_cond,
                                    heads=heads, dim_head=dim_head)
        if cond_scale != 1:
            null_logits = transformer_logits(tp, ids, ctx_kvs, mask_null,
                                             heads=heads, dim_head=dim_head)
            logits = null_logits + (logits - null_logits) * cond_scale

        kk = math.ceil((1 - topk_filter_thres) * logits.shape[-1])
        topv, _ = jax.lax.top_k(logits, kk)
        kth = topv[..., -1:]
        filtered_logits = jnp.where(logits >= kth, logits, -jnp.inf)

        temp = starting_temperature * (steps_until_x0 / timesteps)
        key, sub = jax.random.split(key)
        u = jax.random.uniform(sub, filtered_logits.shape, jnp.float32)
        gnoise = -jnp.log(jnp.clip(-jnp.log(jnp.clip(u, 1e-20)), 1e-20))
        pred_ids = jnp.argmax(filtered_logits / max(temp, 1e-10) + gnoise,
                              axis=-1).astype(jnp.int32)

        is_mask = ids == mask_id
        ids = jnp.where(is_mask, pred_ids, ids)

        # remask scores from softmax probabilities (upstream behaviour)
        probs = jax.nn.softmax(logits, axis=-1)
        gathered = jnp.take_along_axis(probs, pred_ids[..., None], axis=-1)
        scores = 1.0 - gathered[..., 0]
        scores = jnp.where(is_mask, scores, -1e5)   # can_remask_prev_masked=False

    return ids.reshape(b, fmap_size, fmap_size)


class MusePallas:
    """Muse.forward: base MaskGit.generate -> superres MaskGit.generate."""

    def __init__(self, key, *, num_tokens, dim, dim_head, heads, depth,
                 ff_mult, text_embed_dim, base_fmap, superres_fmap):
        kb, ks = jax.random.split(key)
        self.num_tokens = num_tokens
        self.mask_id = num_tokens
        self.heads, self.dim_head = heads, dim_head
        self.base_fmap, self.superres_fmap = base_fmap, superres_fmap
        self.base_tp = init_transformer_params(
            kb, num_tokens=num_tokens, dim=dim, seq_len=base_fmap ** 2,
            depth=depth, dim_head=dim_head, heads=heads, ff_mult=ff_mult,
            text_embed_dim=text_embed_dim)
        self.superres_tp = init_transformer_params(
            ks, num_tokens=num_tokens, dim=dim, seq_len=superres_fmap ** 2,
            depth=depth, dim_head=dim_head, heads=heads, ff_mult=ff_mult,
            text_embed_dim=text_embed_dim)

    def __call__(self, text_embeds, *, cond_scale=3.0, temperature=1.0,
                 timesteps=18, superres_timesteps=None, return_lowres=False,
                 key=None):
        key = jax.random.PRNGKey(1) if key is None else key
        k_base, k_sr = jax.random.split(key)
        common = dict(mask_id=self.mask_id, heads=self.heads,
                      dim_head=self.dim_head, temperature=temperature,
                      cond_scale=cond_scale)

        # TODO(synk): the T5 text encoder has no Pallas equivalent here;
        # precomputed `text_embeds` stand in for `encode_text(texts)`.
        lowres_ids = maskgit_generate(
            self.base_tp, text_embeds, fmap_size=self.base_fmap,
            key=k_base, timesteps=timesteps, **common)

        # TODO(synk): the VQGanVAE decode/encode pair (lowres ids -> image ->
        # cond_vae token ids) and PIL conversion have no Pallas equivalent;
        # the lowres token map is fed directly as superres conditioning tokens
        # and outputs are token maps rather than decoded images.
        superres_ids = maskgit_generate(
            self.superres_tp, text_embeds, fmap_size=self.superres_fmap,
            key=k_sr, cond_token_ids=lowres_ids,
            timesteps=timesteps if superres_timesteps is None else superres_timesteps,
            **common)

        if not return_lowres:
            return superres_ids
        return superres_ids, lowres_ids


# ----------------------------------------------------------------------------
# Demo
# ----------------------------------------------------------------------------

if __name__ == "__main__":
    root = jax.random.PRNGKey(0)
    k_model, k_text, k_sample = jax.random.split(root, 3)

    # small but lane-dense configuration: batch=2, text_len=6, text_dim=64,
    # model dim=128, 2 heads x 128 head-dim, depth 1, ff_mult=3 (ff_inner=256),
    # codebook 128, base 4x4 -> superres 8x8.
    B, TEXT_LEN, TEXT_DIM = 2, 6, 64
    NUM_TOKENS = 128
    muse = MusePallas(k_model, num_tokens=NUM_TOKENS, dim=128, dim_head=128,
                      heads=2, depth=1, ff_mult=3, text_embed_dim=TEXT_DIM,
                      base_fmap=4, superres_fmap=8)

    text_embeds = jax.random.normal(k_text, (B, TEXT_LEN, TEXT_DIM), jnp.float32)
    # zero out one text position to exercise the context-mask path
    text_embeds = text_embeds.at[1, -1, :].set(0.0)

    superres_ids, lowres_ids = muse(text_embeds, cond_scale=3.0,
                                    temperature=1.0, timesteps=3,
                                    superres_timesteps=2,
                                    return_lowres=True, key=k_sample)
    jax.block_until_ready(superres_ids)
    jax.block_until_ready(lowres_ids)

    assert lowres_ids.shape == (B, 4, 4)
    assert superres_ids.shape == (B, 8, 8)
    assert int(jnp.max(superres_ids)) < NUM_TOKENS and int(jnp.min(superres_ids)) >= 0
    assert int(jnp.max(lowres_ids)) < NUM_TOKENS and int(jnp.min(lowres_ids)) >= 0
    print("KERNEL_OK")
</pallas_src>

<mosaic_0001>
module attributes {stable_mosaic.version = 11 : i64} {
  func.func @_matmul_kernel(%arg0: i32, %arg1: i32, %arg2: memref<12x64xbf16, #tpu.memory_space<vmem>>, %arg3: memref<64x128xbf16, #tpu.memory_space<vmem>>, %arg4: memref<12x128xbf16, #tpu.memory_space<vmem>>) attributes {dimension_semantics = [#tpu.dimension_semantics<parallel>, #tpu.dimension_semantics<parallel>], iteration_bounds = array<i64: 1, 1>, scalar_prefetch = 0 : i64, scratch_operands = 0 : i64, tpu.core_type = #tpu.core_type<tc>, window_params = [{transform_indices = @transform_0, window_bounds = array<i64: 12, 64>}, {transform_indices = @transform_1, window_bounds = array<i64: 64, 128>}, {transform_indices = @transform_2, window_bounds = array<i64: 12, 128>}]} {
    %c0 = arith.constant 0 : index
    %c0_0 = arith.constant 0 : index
    %0 = vector.load %arg2[%c0, %c0_0] : memref<12x64xbf16, #tpu.memory_space<vmem>>, vector<12x64xbf16>
    %c0_1 = arith.constant 0 : index
    %c0_2 = arith.constant 0 : index
    %1 = vector.load %arg3[%c0_1, %c0_2] : memref<64x128xbf16, #tpu.memory_space<vmem>>, vector<64x128xbf16>
    %cst = arith.constant dense<0.000000e+00> : vector<12x128xf32>
    %2 = tpu.matmul %0, %1, %cst {dimension_numbers = #tpu.dot_dimension_numbers<[1], [0], [0], [1], [0, 0, 1, 1], [], []>} : vector<12x64xbf16>, vector<64x128xbf16>, vector<12x128xf32> -> vector<12x128xf32>
    %3 = arith.truncf %2 : vector<12x128xf32> to vector<12x128xbf16>
    %c0_3 = arith.constant 0 : index
    %c0_4 = arith.constant 0 : index
    %4 = vector.load %arg4[%c0_3, %c0_4] : memref<12x128xbf16, #tpu.memory_space<vmem>>, vector<12x128xbf16>
    tpu.vector_store %arg4[%c0_3, %c0_4], %3 {strides = array<i32>} : memref<12x128xbf16, #tpu.memory_space<vmem>>, vector<12x128xbf16>,
    return
  }
  func.func @transform_0(%arg0: i32, %arg1: i32) -> (i32, i32) {
    %c0_i32 = arith.constant 0 : i32
    %c0_i32_0 = arith.constant 0 : i32
    return %arg0, %c0_i32 : i32, i32
  }
  func.func @transform_1(%arg0: i32, %arg1: i32) -> (i32, i32) {
    %c0_i32 = arith.constant 0 : i32
    %c0_i32_0 = arith.constant 0 : i32
    return %c0_i32, %arg1 : i32, i32
  }
  func.func @transform_2(%arg0: i32, %arg1: i32) -> (i32, i32) {
    %c0_i32 = arith.constant 0 : i32
    return %arg0, %arg1 : i32, i32
  }
}

module attributes {stable_mosaic.version = 11 : i64} {
  func.func @_matmul_kernel(%arg0: i32, %arg1: i32, %arg2: memref<12x128xbf16, #tpu.memory_space<vmem>>, %arg3: memref<128x512xbf16, #tpu.memory_space<vmem>>, %arg4: memref<12x512xbf16, #tpu.memory_space<vmem>>) attributes {dimension_semantics = [#tpu.dimension_semantics<parallel>, #tpu.dimension_semantics<parallel>], iteration_bounds = array<i64: 1, 1>, scalar_prefetch = 0 : i64, scratch_operands = 0 : i64, tpu.core_type = #tpu.core_type<tc>, window_params = [{transform_indices = @transform_0, window_bounds = array<i64: 12, 128>}, {transform_indices = @transform_1, window_bounds = array<i64: 128, 512>}, {transform_indices = @transform_2, window_bounds = array<i64: 12, 512>}]} {
    %c0 = arith.constant 0 : index
    %c0_0 = arith.constant 0 : index
    %0 = vector.load %arg2[%c0, %c0_0] : memref<12x128xbf16, #tpu.memory_space<vmem>>, vector<12x128xbf16>
    %c0_1 = arith.constant 0 : index
    %c0_2 = arith.constant 0 : index
    %1 = vector.load %arg3[%c0_1, %c0_2] : memref<128x512xbf16, #tpu.memory_space<vmem>>, vector<128x512xbf16>
    %cst = arith.constant dense<0.000000e+00> : vector<12x512xf32>
    %2 = tpu.matmul %0, %1, %cst {dimension_numbers = #tpu.dot_dimension_numbers<[1], [0], [0], [1], [0, 0, 1, 1], [], []>} : vector<12x128xbf16>, vector<128x512xbf16>, vector<12x512xf32> -> vector<12x512xf32>
    %3 = arith.truncf %2 : vector<12x512xf32> to vector<12x512xbf16>
    %c0_3 = arith.constant 0 : index
    %c0_4 = arith.constant 0 : index
    %4 = vector.load %arg4[%c0_3, %c0_4] : memref<12x512xbf16, #tpu.memory_space<vmem>>, vector<12x512xbf16>
    tpu.vector_store %arg4[%c0_3, %c0_4], %3 {strides = array<i32>} : memref<12x512xbf16, #tpu.memory_space<vmem>>, vector<12x512xbf16>,
    return
  }
  func.func @transform_0(%arg0: i32, %arg1: i32) -> (i32, i32) {
    %c0_i32 = arith.constant 0 : i32
    %c0_i32_0 = arith.constant 0 : i32
    return %arg0, %c0_i32 : i32, i32
  }
  func.func @transform_1(%arg0: i32, %arg1: i32) -> (i32, i32) {
    %c0_i32 = arith.constant 0 : i32
    %c0_i32_0 = arith.constant 0 : i32
    return %c0_i32, %arg1 : i32, i32
  }
  func.func @transform_2(%arg0: i32, %arg1: i32) -> (i32, i32) {
    %c0_i32 = arith.constant 0 : i32
    return %arg0, %arg1 : i32, i32
  }
}

</mosaic_0001>

<bundles_post_ra>
// kernel: prepare_context.2
= control target key start
LH: loop header
LB: loop body
LE: loop exit
PB: predicated region body
PF: predicated region fallthrough
CT: control target
= control target key end

     0   :  { %v144_v0 = vmov 0.0   ;;  %vm145_vm0 = vmmov 0   ;;  %vm51_vm1 = vcmask 523264   ;;  %s182_s1 = inlined_call_operand.vmem [shape: bf16[64,128], index: 1, kind: input, shape index: {}]   ;;  %s183_s0 = inlined_call_operand.vmem [shape: bf16[12,64], index: 0, kind: input, shape index: {}]   ;;  %s184_s2 = inlined_call_operand.vmem [shape: bf16[12,128], index: 2, kind: output, shape index: {}]  }
   0x1   :  { %125 = vmatprep.subr.bf16.mxu0 %v144_v0  ;;  %v139_v1 = vld [vmem:[%s182_s1] sm:$0xff]   ;;  %133 = vmatprep.mubr.msk.bf16.mxu0 %vm145_vm0, %v144_v0  ;;  %v140_v2 = vld [vmem:[%s182_s1 + $0x8] sm:$0xff]   ;;  %v141_v3 = vld [vmem:[%s182_s1 + $0x10] sm:$0xff]  }
   0x2   :  { %126 = vmatpush3.bf16.msra.mxu0 %v139_v1  ;;  %v142_v4 = vld [vmem:[%s182_s1 + $0x18] sm:$0xff]   ;;  %v143_v5 = vld [vmem:[%s183_s0] sm:$0x3f]  }
   0x3   :  { %127 = vmatprep.subr.bf16.mxu0 %v144_v0 }
   0x6   :  { %128 = vmatpush3.bf16.msra.mxu0 %v140_v2 }
   0x7   :  { %129 = vmatprep.subr.bf16.mxu0 %v144_v0 }
   0xa   :  { %130 = vmatpush3.bf16.msra.mxu0 %v141_v3 }
   0xb   :  { %131 = vmatprep.subr.bf16.mxu0 %v144_v0 }
   0xe   :  { %132 = vmatpush3.bf16.msra.mxu0 %v142_v4 }
  0x11   :  { %134 = vmatmul.mubr.msk.bf16.vlgmr.msra.gmra.mrb[0].mxu0 %vm51_vm1, %v143_v5 }
  0xe4   :  { %v89_v6 = vpop.f32.mrb[0].mxu0 }
  0xe5   :  { %v118_v7 = vpack.c.bf16 %v89_v6, %v89_v6  ;;  %v135_v8 = vpop.f32.mrb[1].mxu0 }
  0xe6   :  { %v92_v9 = vpop.f32.mrb[2].mxu0 }
  0xe7   :  { %104 = vst [vmem:[%s184_s2] sm:$0xf] %v118_v7  ;;  %v119_v10 = vpack.c.bf16 %v92_v9, %v92_v9  ;;  %v136_v11 = vpop.f32.mrb[3].mxu0 }
  0xe9   :  { %105 = vst [vmem:[%s184_s2 + $0x4] sm:$0x3] %v119_v10 }

// kernel: prepare_context.3
= control target key start
LH: loop header
LB: loop body
LE: loop exit
PB: predicated region body
PF: predicated region fallthrough
CT: control target
= control target key end

     0   :  { %7 = vsyncpa [#allocation3], 0  ;;  %s463_s9 = smov [#allocation2]   ;;  %s509_s0 = inlined_call_operand.vmem [shape: bf16[12,128], index: 0, kind: input, shape index: {}]   ;;  %s510_s1 = inlined_call_operand.hbm [shape: bf16[128,512], index: 1, kind: input, shape index: {}]   ;;  %s511_s2 = inlined_call_operand.vmem [shape: bf16[12,512], index: 2, kind: output, shape index: {}]  }
   0x1   :  { %s15_s10 = sshll.u32 %s463_s9, 4  ;;  %s439_s13 = scalar_lea.hbm %s510_s1, 4096  ;;  %s16_s10 = int_to_ptr.vmem [resolvable:$true] %s15_s10 }
   0x2   :  { %p440_p0 = scmp.ne.s32.totalorder %s510_s1, %s439_s13  ;;  %p443_p1 = scmp.lt.u32.totalorder %s439_s13, %s510_s1 }
   0x4   :  { %p445_p2 = pnand %p443_p1, %p440_p0 }
   0x6   :  { %448 = shalt.err (!%p445_p2)
}
   0x7   :  { %s449_s18 = scalar_lea.vmem %s16_s10, 4096  ;;  %p454_p4 = scmp.lt.s32.totalorder %s16_s10, %s16_s10 }
   0x8   :  { %p450_p3 = scmp.ne.s32.totalorder %s16_s10, %s449_s18  ;;  %p455_p5 = scmp.lt.s32.totalorder %s449_s18, %s449_s18 }
   0xa   :  { %p456_p6 = por %p455_p5, %p454_p4 }
   0xc   :  { %p457_p7 = pnand %p456_p6, %p450_p3 }
   0xe   :  { %460 = shalt.err (!%p457_p7)
}
   0xf   :  { %s464_s19 = smov 256   ;;  %s465_s20 = smov 16  }
  0x10   :  { %21 = dma.hbm_to_vmem [thread:$0]  %s510_s1, 4096, %s16_s10, [#allocation3], %s464_s19, %s464_s19, %s465_s20  }
  0x11   :  { %461 = dma.done.wait [#allocation3], 4096  }
  0x12   :  { %462 = vsyncadd [#allocation3], 4294963200  ;;  %v466_v0 = vmov 0   ;;  %v390_v1 = vld [vmem:[#allocation2 + $0x4] ss:$16 sps:$4 sm:$0xff]  }
  0x13   :  { %258 = vmatprep.mubr.bf16.mxu0 %v466_v0  ;;  %301 = vmatprep.mubr.bf16.mxu1 %v466_v0  ;;  %v392_v2 = vld [vmem:[#allocation2 + $0xc] ss:$16 sps:$4 sm:$0xff]   ;;  %v394_v3 = vld [vmem:[#allocation2] ss:$16 sps:$4 sm:$0xff]   ;;  %v395_v4 = vld [vmem:[#allocation2 + $0x8] ss:$16 sps:$4 sm:$0xff]  }
  0x14   :  { %226 = vmatprep.subr.bf16.mxu0 %v390_v1  ;;  %269 = vmatprep.subr.bf16.mxu1 %v392_v2  ;;  %v396_v5 = vld [vmem:[#allocation2 + $0x24] ss:$16 sps:$4 sm:$0xff]   ;;  %v398_v6 = vld [vmem:[#allocation2 + $0x2c] ss:$16 sps:$4 sm:$0xff]   ;;  %v400_v7 = vld [vmem:[#allocation2 + $0x20] ss:$16 sps:$4 sm:$0xff]  }
  0x15   :  { %227 = vmatpush1.bf16.msra.mxu0 %v394_v3  ;;  %270 = vmatpush1.bf16.msra.mxu1 %v395_v4  ;;  %v401_v8 = vld [vmem:[#allocation2 + $0x28] ss:$16 sps:$4 sm:$0xff]   ;;  %v402_v9 = vld [vmem:[#allocation2 + $0x44] ss:$16 sps:$4 sm:$0xff]   ;;  %v404_v10 = vld [vmem:[#allocation2 + $0x4c] ss:$16 sps:$4 sm:$0xff]  }
  0x16   :  { %228 = vmatprep.subr.bf16.mxu0 %v396_v5  ;;  %271 = vmatprep.subr.bf16.mxu1 %v398_v6  ;;  %v406_v11 = vld [vmem:[#allocation2 + $0x40] ss:$16 sps:$4 sm:$0xff]   ;;  %v407_v12 = vld [vmem:[#allocation2 + $0x48] ss:$16 sps:$4 sm:$0xff]   ;;  %v408_v13 = vld [vmem:[#allocation2 + $0x64] ss:$16 sps:$4 sm:$0xff]  }
  0x17   :  { %v410_v14 = vld [vmem:[#allocation2 + $0x6c] ss:$16 sps:$4 sm:$0xff]   ;;  %v412_v15 = vld [vmem:[#allocation2 + $0x60] ss:$16 sps:$4 sm:$0xff]   ;;  %v413_v16 = vld [vmem:[#allocation2 + $0x68] ss:$16 sps:$4 sm:$0xff]  }
  0x18   :  { %v414_v17 = vld [vmem:[#allocation2 + $0x84] ss:$16 sps:$4 sm:$0xff]   ;;  %v416_v18 = vld [vmem:[#allocation2 + $0x8c] ss:$16 sps:$4 sm:$0xff]   ;;  %v418_v19 = vld [vmem:[#allocation2 + $0x80] ss:$16 sps:$4 sm:$0xff]  }
  0x19   :  { %229 = vmatpush1.bf16.msra.mxu0 %v400_v7  ;;  %272 = vmatpush1.bf16.msra.mxu1 %v401_v8  ;;  %v419_v20 = vld [vmem:[#allocation2 + $0x88] ss:$16 sps:$4 sm:$0xff]   ;;  %v420_v21 = vld [vmem:[#allocation2 + $0xa4] ss:$16 sps:$4 sm:$0xff]   ;;  %v422_v22 = vld [vmem:[#allocation2 + $0xac] ss:$16 sps:$4 sm:$0xff]  }
  0x1a   :  { %230 = vmatprep.subr.bf16.mxu0 %v402_v9  ;;  %273 = vmatprep.subr.bf16.mxu1 %v404_v10  ;;  %v424_v23 = vld [vmem:[#allocation2 + $0xa0] ss:$16 sps:$4 sm:$0xff]   ;;  %v425_v24 = vld [vmem:[#allocation2 + $0xa8] ss:$16 sps:$4 sm:$0xff]   ;;  %v426_v25 = vld [vmem:[#allocation2 + $0xc4] ss:$16 sps:$4 sm:$0xff]  }
  0x1b   :  { %v428_v26 = vld [vmem:[#allocation2 + $0xcc] ss:$16 sps:$4 sm:$0xff]   ;;  %v430_v27 = vld [vmem:[#allocation2 + $0xc0] ss:$16 sps:$4 sm:$0xff]   ;;  %v431_v28 = vld [vmem:[#allocation2 + $0xc8] ss:$16 sps:$4 sm:$0xff]  }
  0x1c   :  { %v432_v29 = vld [vmem:[#allocation2 + $0xe4] ss:$16 sps:$4 sm:$0xff]   ;;  %v434_v30 = vld [vmem:[#allocation2 + $0xec] ss:$16 sps:$4 sm:$0xff]   ;;  %v436_v31 = vld [vmem:[#allocation2 + $0xe0] ss:$16 sps:$4 sm:$0xff]  }
  0x1d   :  { %231 = vmatpush1.bf16.msra.mxu0 %v406_v11  ;;  %274 = vmatpush1.bf16.msra.mxu1 %v407_v12  ;;  %v437_v32 = vld [vmem:[#allocation2 + $0xe8] ss:$16 sps:$4 sm:$0xff]   ;;  %v438_v33 = vld [vmem:[%s509_s0] sm:$0x3f]  }
  0x1e   :  { %232 = vmatprep.subr.bf16.mxu0 %v408_v13  ;;  %275 = vmatprep.subr.bf16.mxu1 %v410_v14 }
  0x21   :  { %233 = vmatpush1.bf16.msra.mxu0 %v412_v15  ;;  %276 = vmatpush1.bf16.msra.mxu1 %v413_v16 }
  0x22   :  { %234 = vmatprep.subr.bf16.mxu0 %v414_v17  ;;  %277 = vmatprep.subr.bf16.mxu1 %v416_v18 }
  0x25   :  { %235 = vmatpush1.bf16.msra.mxu0 %v418_v19  ;;  %278 = vmatpush1.bf16.msra.mxu1 %v419_v20 }
  0x26   :  { %236 = vmatprep.subr.bf16.mxu0 %v420_v21  ;;  %279 = vmatprep.subr.bf16.mxu1 %v422_v22 }
  0x29   :  { %237 = vmatpush1.bf16.msra.mxu0 %v424_v23  ;;  %280 = vmatpush1.bf16.msra.mxu1 %v425_v24 }
  0x2a   :  { %238 = vmatprep.subr.bf16.mxu0 %v426_v25  ;;  %281 = vmatprep.subr.bf16.mxu1 %v428_v26 }
  0x2d   :  { %239 = vmatpush1.bf16.msra.mxu0 %v430_v27  ;;  %282 = vmatpush1.bf16.msra.mxu1 %v431_v28 }
  0x2e   :  { %240 = vmatprep.subr.bf16.mxu0 %v432_v29  ;;  %283 = vmatprep.subr.bf16.mxu1 %v434_v30 }
  0x31   :  { %241 = vmatpush1.bf16.msra.mxu0 %v436_v31  ;;  %284 = vmatpush1.bf16.msra.mxu1 %v437_v32 }
  0x34   :  { %259 = vmatmul.mubr.bf16.vlgmr.msra.gmra.mrb[0].mxu0 %v438_v33  ;;  %302 = vmatmul.mubr.bf16.vlgmr.msra.gmra.mrb[0].mxu1 %v438_v33 }
 0x107   :  { %v260_v34 = vpop.f32.mrb[0].mxu0  ;;  %v303_v35 = vpop.f32.mrb[0].mxu1 }
 0x108   :  { %v262_v36 = vpop.f32.mrb[1].mxu0  ;;  %v305_v37 = vpop.f32.mrb[1].mxu1 }
 0x109   :  { %v382_v38 = vpack.c.bf16 %v262_v36, %v260_v34  ;;  %v383_v39 = vpack.c.bf16 %v305_v37, %v303_v35  ;;  %v264_v40 = vpop.f32.mrb[2].mxu0  ;;  %v307_v41 = vpop.f32.mrb[2].mxu1 }
 0x10a   :  { %v266_v42 = vpop.f32.mrb[3].mxu0  ;;  %v309_v43 = vpop.f32.mrb[3].mxu1 }
 0x10b   :  { %336 = vst [vmem:[%s511_s2] sm:$0xff] %v382_v38  ;;  %337 = vst [vmem:[%s511_s2 + $0x8] sm:$0xff] %v383_v39  ;;  %v384_v44 = vpack.c.bf16 %v266_v42, %v264_v40  ;;  %v385_v45 = vpack.c.bf16 %v309_v43, %v307_v41 }
 0x10d   :  { %338 = vst [vmem:[%s511_s2 + $0x10] sm:$0x33] %v384_v44  ;;  %339 = vst [vmem:[%s511_s2 + $0x18] sm:$0x33] %v385_v45 }
 0x10e   :  { %344 = vsyncpa [#allocation3], 1 }

</bundles_post_ra>
